<compile_context>
chip_gen: v6e
topology: v6e:2x2x1
jax: 0.10.0
libtpu: 0.0.40
codegen_flags: <defaults>
</compile_context>

<pallas_src>
import functools

import jax
import jax.numpy as jnp
from jax.experimental import pallas as pl
from jax.experimental.pallas import tpu as pltpu

LANE = 128              # vreg lane width
MAX_BLOCK_ROWS = 2048   # 2048 x 128 x 4B = 1 MiB per f32 input block


# --------------------------------------------------------------------------
# Kernel 1: single-pass sufficient statistics (pos/neg counts, pos/neg sums).
# --------------------------------------------------------------------------
def _bbce_reduce_kernel(x_ref, t_ref, out_ref, *, n_elem, block_rows,
                        blocks_per_core, ignore_index):
    c = pl.program_id(0)   # core-split axis ("parallel")
    i = pl.program_id(1)   # row-block sweep ("arbitrary", accumulation)

    @pl.when(i == 0)
    def _():
        out_ref[...] = jnp.zeros_like(out_ref)

    x = x_ref[...].astype(jnp.float32)
    t = t_ref[...].astype(jnp.float32)

    # Global element index of each slot -> mask for the ragged tail and for
    # duplicated (clamped) blocks on the second core.  Cheap VPU filler under
    # the HBM bound.
    blk = c * blocks_per_core + i
    row = jax.lax.broadcasted_iota(jnp.int32, (block_rows, LANE), 0)
    lane = jax.lax.broadcasted_iota(jnp.int32, (block_rows, LANE), 1)
    gidx = blk * (block_rows * LANE) + row * LANE + lane
    in_bounds = gidx < n_elem

    # Counts of hard positive / negative targets: computed on raw targets,
    # not masked by ignore_index -- matches the PyTorch reference.
    pos = jnp.where(in_bounds & (t == 1.0), 1.0, 0.0)
    neg = jnp.where(in_bounds & (t == 0.0), 1.0, 0.0)

    # Loss terms are additionally zeroed where targets == ignore_index
    # (matches torch.masked_fill(loss, targets.eq(ignore_index), 0)).
    keep = in_bounds
    if ignore_index is not None:
        keep = keep & (t != jnp.float32(ignore_index))

    # Numerically stable log-sigmoid:
    #   logsigmoid(x)  = min(x, 0)  - log1p(exp(-|x|))
    #   logsigmoid(-x) = min(-x, 0) - log1p(exp(-|x|))
    log1pexp = jnp.log1p(jnp.exp(-jnp.abs(x)))
    ls_pos = jnp.minimum(x, 0.0) - log1pexp
    ls_neg = jnp.minimum(-x, 0.0) - log1pexp

    pos_term = jnp.where(keep, t * ls_pos, 0.0)
    neg_term = jnp.where(keep, (1.0 - t) * ls_neg, 0.0)

    # Fold each (block_rows, 128) slab into one (8, 128) vreg with VALU adds
    # only (the reshape splits exactly on the sublane-tile boundary).
    sub = block_rows // 8
    out_ref[0, 0] += pos.reshape(sub, 8, LANE).sum(axis=0)
    out_ref[0, 1] += neg.reshape(sub, 8, LANE).sum(axis=0)
    out_ref[0, 2] += pos_term.reshape(sub, 8, LANE).sum(axis=0)
    out_ref[0, 3] += neg_term.reshape(sub, 8, LANE).sum(axis=0)


# --------------------------------------------------------------------------
# Kernel 2: elementwise loss (reduction='none'), weights via scalar prefetch.
# --------------------------------------------------------------------------
def _bbce_elem_kernel(w_ref, x_ref, t_ref, o_ref, *, ignore_index):
    x = x_ref[...].astype(jnp.float32)
    t = t_ref[...].astype(jnp.float32)
    log1pexp = jnp.log1p(jnp.exp(-jnp.abs(x)))
    ls_pos = jnp.minimum(x, 0.0) - log1pexp
    ls_neg = jnp.minimum(-x, 0.0) - log1pexp
    loss = -(w_ref[0] * (t * ls_pos) + w_ref[1] * ((1.0 - t) * ls_neg))
    if ignore_index is not None:
        loss = jnp.where(t == jnp.float32(ignore_index), 0.0, loss)
    o_ref[...] = loss


# --------------------------------------------------------------------------
# Layout helper: flatten to (rows, 128), pad only the ragged lane/sublane tail.
# --------------------------------------------------------------------------
def _layout(flat_x, flat_t):
    n = flat_x.shape[0]
    rem = n % LANE
    if rem:
        pad = LANE - rem
        flat_x = jnp.pad(flat_x, (0, pad))
        flat_t = jnp.pad(flat_t, (0, pad))
    rows = flat_x.shape[0] // LANE
    x2d = flat_x.reshape(rows, LANE)
    t2d = flat_t.reshape(rows, LANE)

    if rows >= MAX_BLOCK_ROWS:
        block_rows = MAX_BLOCK_ROWS          # multiple of 8; last block ragged
    else:
        extra = (-rows) % 8                  # tiny inputs: pad to sublane mult.
        if extra:
            x2d = jnp.pad(x2d, ((0, extra), (0, 0)))
            t2d = jnp.pad(t2d, ((0, extra), (0, 0)))
            rows += extra
        block_rows = rows                    # single full-extent block
    total_blocks = pl.cdiv(rows, block_rows)
    return x2d, t2d, rows, block_rows, total_blocks


def _compute_stats(x2d, t2d, n_elem, block_rows, total_blocks, ignore_index):
    ncores = 2 if total_blocks >= 2 else 1   # megacore split (v7x); on 1-TC
    bpc = pl.cdiv(total_blocks, ncores)      # chips the axis runs sequentially

    def in_map(c, i):
        # Clamp so the overhang block of the second core re-reads the last
        # valid block; its contribution is fully masked in-kernel.
        return (jnp.minimum(c * bpc + i, total_blocks - 1), 0)

    kernel = functools.partial(
        _bbce_reduce_kernel, n_elem=n_elem, block_rows=block_rows,
        blocks_per_core=bpc, ignore_index=ignore_index)

    partials = pl.pallas_call(
        kernel,
        out_shape=jax.ShapeDtypeStruct((ncores, 4, 8, LANE), jnp.float32),
        grid_spec=pltpu.PrefetchScalarGridSpec(
            num_scalar_prefetch=0,
            grid=(ncores, bpc),
            in_specs=[
                pl.BlockSpec((block_rows, LANE), in_map),
                pl.BlockSpec((block_rows, LANE), in_map),
            ],
            out_specs=pl.BlockSpec((1, 4, 8, LANE), lambda c, i: (c, 0, 0, 0)),
        ),
        compiler_params=pltpu.CompilerParams(
            dimension_semantics=("parallel", "arbitrary")),
    )(x2d, t2d)

    # Tiny final reduce (ncores*4*8*128 floats) in plain XLA.
    sums = jnp.sum(partials, axis=(0, 2, 3))
    return sums[0], sums[1], sums[2], sums[3]


def balanced_bce_with_logits(logits, targets, gamma=1.0, reduction="mean",
                             ignore_index=None):
    """JAX/Pallas equivalent of balanced_binary_cross_entropy_with_logits."""
    assert logits.shape == targets.shape
    n_elem = int(logits.size)
    assert n_elem > 0, "empty input"

    flat_x = logits.reshape(-1)
    flat_t = targets.reshape(-1)
    x2d, t2d, rows, block_rows, total_blocks = _layout(flat_x, flat_t)

    pos_cnt, neg_cnt, pos_sum, neg_sum = _compute_stats(
        x2d, t2d, n_elem, block_rows, total_blocks, ignore_index)

    num_targets = pos_cnt + neg_cnt
    pos_weight = jnp.power(neg_cnt / (num_targets + 1e-07), jnp.float32(gamma))
    neg_weight = 1.0 - pos_weight
    # gamma is applied twice (on the ratio and on the weight) exactly as in
    # the PyTorch reference being mirrored.
    w_pos = jnp.power(pos_weight, jnp.float32(gamma))
    w_neg = jnp.power(neg_weight, jnp.float32(gamma))

    if reduction == "mean":
        return -(w_pos * pos_sum + w_neg * neg_sum) / jnp.float32(n_elem)
    if reduction == "sum":
        return -(w_pos * pos_sum + w_neg * neg_sum)

    # Any other reduction (e.g. 'none') returns the per-element loss tensor,
    # like the PyTorch reference.  Second (elementwise) pass over HBM is
    # unavoidable because the class weights depend on global counts.
    weights = jnp.stack([w_pos, w_neg]).astype(jnp.float32)
    kernel = functools.partial(_bbce_elem_kernel, ignore_index=ignore_index)
    loss2d = pl.pallas_call(
        kernel,
        out_shape=jax.ShapeDtypeStruct((rows, LANE), jnp.float32),
        grid_spec=pltpu.PrefetchScalarGridSpec(
            num_scalar_prefetch=1,          # weights -> SMEM
            grid=(total_blocks,),
            in_specs=[
                pl.BlockSpec((block_rows, LANE), lambda i, w: (i, 0)),
                pl.BlockSpec((block_rows, LANE), lambda i, w: (i, 0)),
            ],
            out_specs=pl.BlockSpec((block_rows, LANE), lambda i, w: (i, 0)),
        ),
        compiler_params=pltpu.CompilerParams(
            dimension_semantics=("parallel",)),
    )(weights, x2d, t2d)
    return loss2d.reshape(-1)[:n_elem].reshape(logits.shape)


class BalancedBCEWithLogitsLoss:
    """Mirror of the PyTorch module (gamma, reduction, ignore_index)."""

    def __init__(self, gamma: float = 1.0, reduction: str = "mean",
                 ignore_index=None):
        self.gamma = gamma
        self.reduction = reduction
        self.ignore_index = ignore_index

    def __call__(self, output, target):
        return balanced_bce_with_logits(
            output, target, gamma=self.gamma,
            reduction=self.reduction, ignore_index=self.ignore_index)


def _reference(logits, targets, gamma=1.0, reduction="mean", ignore_index=None):
    """Pure-JAX reference mirroring the PyTorch math (for sanity checking)."""
    t = targets.astype(jnp.float32)
    x = logits.astype(jnp.float32)
    pos_t = jnp.sum(t == 1.0).astype(jnp.float32)
    neg_t = jnp.sum(t == 0.0).astype(jnp.float32)
    num_t = pos_t + neg_t
    pos_w = jnp.power(neg_t / (num_t + 1e-07), gamma)
    neg_w = 1.0 - pos_w
    logsig = jax.nn.log_sigmoid
    pos_term = jnp.power(pos_w, gamma) * t * logsig(x)
    neg_term = jnp.power(neg_w, gamma) * (1.0 - t) * logsig(-x)
    loss = -(pos_term + neg_term)
    if ignore_index is not None:
        loss = jnp.where(t == ignore_index, 0.0, loss)
    if reduction == "mean":
        return jnp.mean(loss)
    if reduction == "sum":
        return jnp.sum(loss)
    return loss


if __name__ == "__main__":
    key = jax.random.PRNGKey(0)
    k1, k2, k3, k4, k5, k6, k7 = jax.random.split(key, 7)

    # 1) Standard NCHW f32 case, mean reduction.
    B, C, H, W = 2, 4, 16, 16
    logits = jax.random.normal(k1, (B, C, H, W), dtype=jnp.float32) * 2.0
    targets = (jax.random.uniform(k2, (B, C, H, W)) > 0.7).astype(jnp.float32)

    loss_fn = BalancedBCEWithLogitsLoss(gamma=1.0, reduction="mean")
    loss = jax.block_until_ready(loss_fn(logits, targets))
    ref = jax.block_until_ready(
        _reference(logits, targets, gamma=1.0, reduction="mean"))
    assert jnp.isfinite(loss), "loss is not finite"
    assert jnp.allclose(loss, ref, rtol=1e-5, atol=1e-5), (loss, ref)

    # 2) Ragged shape (exercises LANE/sublane padding + masking), gamma=2, sum.
    logits2 = jax.random.normal(k3, (2, 3, 15, 17), dtype=jnp.float32)
    targets2 = (jax.random.uniform(k4, (2, 3, 15, 17)) > 0.5).astype(jnp.float32)
    loss2 = jax.block_until_ready(
        balanced_bce_with_logits(logits2, targets2, gamma=2.0, reduction="sum"))
    ref2 = jax.block_until_ready(
        _reference(logits2, targets2, gamma=2.0, reduction="sum"))
    assert jnp.isfinite(loss2), "loss2 is not finite"
    assert jnp.allclose(loss2, ref2, rtol=1e-5, atol=1e-5), (loss2, ref2)

    # 3) Per-element loss (reduction='none') with ignore_index.
    logits3 = jax.random.normal(k5, (2, 4, 16, 16), dtype=jnp.float32)
    t3 = (jax.random.uniform(k6, (2, 4, 16, 16)) > 0.6).astype(jnp.float32)
    ignore_mask = jax.random.uniform(k7, (2, 4, 16, 16)) > 0.9
    targets3 = jnp.where(ignore_mask, 2.0, t3)
    loss3 = jax.block_until_ready(balanced_bce_with_logits(
        logits3, targets3, gamma=1.0, reduction="none", ignore_index=2))
    ref3 = jax.block_until_ready(_reference(
        logits3, targets3, gamma=1.0, reduction="none", ignore_index=2))
    assert loss3.shape == logits3.shape
    assert bool(jnp.all(jnp.isfinite(loss3))), "loss3 is not finite"
    assert jnp.allclose(loss3, ref3, rtol=1e-5, atol=1e-5)

    print("KERNEL_OK")
</pallas_src>

<mosaic_0001>
module attributes {stable_mosaic.version = 11 : i64} {
  func.func @_bbce_reduce_kernel(%arg0: i32, %arg1: i32, %arg2: memref<16x128xf32, #tpu.memory_space<vmem>>, %arg3: memref<16x128xf32, #tpu.memory_space<vmem>>, %arg4: memref<1x4x8x128xf32, #tpu.memory_space<vmem>>) attributes {dimension_semantics = [#tpu.dimension_semantics<parallel>, #tpu.dimension_semantics<arbitrary>], iteration_bounds = array<i64: 1, 1>, scalar_prefetch = 0 : i64, scratch_operands = 0 : i64, tpu.core_type = #tpu.core_type<tc>, window_params = [{transform_indices = @transform_0, window_bounds = array<i64: 16, 128>}, {transform_indices = @transform_1, window_bounds = array<i64: 16, 128>}, {transform_indices = @transform_2, window_bounds = array<i64: 1, 4, 8, 128>}]} {
    %c0_i32 = arith.constant 0 : i32
    %0 = arith.cmpi eq, %arg1, %c0_i32 : i32
    %1 = arith.extui %0 : i1 to i32
    %c0_i32_0 = arith.constant 0 : i32
    %2 = arith.cmpi ne, %1, %c0_i32_0 : i32
    scf.if %2 {
      %cst_50 = arith.constant 0.000000e+00 : f32
      %82 = vector.broadcast %cst_50 : f32 to vector<1x4x8x128xf32>
      %c0_51 = arith.constant 0 : index
      %c0_52 = arith.constant 0 : index
      %c0_53 = arith.constant 0 : index
      %c0_54 = arith.constant 0 : index
      %83 = vector.load %arg4[%c0_51, %c0_52, %c0_53, %c0_54] : memref<1x4x8x128xf32, #tpu.memory_space<vmem>>, vector<1x4x8x128xf32>
      tpu.vector_store %arg4[%c0_51, %c0_52, %c0_53, %c0_54], %82 {strides = array<i32>} : memref<1x4x8x128xf32, #tpu.memory_space<vmem>>, vector<1x4x8x128xf32>,
    } else {
    }
    %c0 = arith.constant 0 : index
    %c0_1 = arith.constant 0 : index
    %3 = vector.load %arg2[%c0, %c0_1] : memref<16x128xf32, #tpu.memory_space<vmem>>, vector<16x128xf32>
    %c0_2 = arith.constant 0 : index
    %c0_3 = arith.constant 0 : index
    %4 = vector.load %arg3[%c0_2, %c0_3] : memref<16x128xf32, #tpu.memory_space<vmem>>, vector<16x128xf32>
    %c1_i32 = arith.constant 1 : i32
    %5 = arith.muli %arg0, %c1_i32 : i32
    %6 = arith.addi %5, %arg1 : i32
    %7 = tpu.iota {dimensions = array<i32: 0>} : vector<16x128xi32>
    %8 = tpu.iota {dimensions = array<i32: 1>} : vector<16x128xi32>
    %c2048_i32 = arith.constant 2048 : i32
    %9 = arith.muli %6, %c2048_i32 : i32
    %c128_i32 = arith.constant 128 : i32
    %10 = vector.broadcast %c128_i32 : i32 to vector<16x128xi32>
    %11 = arith.muli %7, %10 : vector<16x128xi32>
    %12 = vector.broadcast %9 : i32 to vector<16x128xi32>
    %13 = arith.addi %12, %11 : vector<16x128xi32>
    %14 = arith.addi %13, %8 : vector<16x128xi32>
    %c2048_i32_4 = arith.constant 2048 : i32
    %15 = vector.broadcast %c2048_i32_4 : i32 to vector<16x128xi32>
    %16 = arith.cmpi slt, %14, %15 : vector<16x128xi32>
    %cst = arith.constant 1.000000e+00 : f32
    %17 = vector.broadcast %cst : f32 to vector<16x128xf32>
    %18 = arith.cmpf oeq, %4, %17 : vector<16x128xf32>
    %19 = arith.andi %16, %18 : vector<16x128xi1>
    %cst_5 = arith.constant 1.000000e+00 : f32
    %cst_6 = arith.constant 0.000000e+00 : f32
    %20 = vector.broadcast %cst_5 : f32 to vector<16x128xf32>
    %21 = vector.broadcast %cst_6 : f32 to vector<16x128xf32>
    %22 = arith.select %19, %20, %21 : vector<16x128xi1>, vector<16x128xf32>
    %cst_7 = arith.constant 0.000000e+00 : f32
    %23 = vector.broadcast %cst_7 : f32 to vector<16x128xf32>
    %24 = arith.cmpf oeq, %4, %23 : vector<16x128xf32>
    %25 = arith.andi %16, %24 : vector<16x128xi1>
    %cst_8 = arith.constant 1.000000e+00 : f32
    %cst_9 = arith.constant 0.000000e+00 : f32
    %26 = vector.broadcast %cst_8 : f32 to vector<16x128xf32>
    %27 = vector.broadcast %cst_9 : f32 to vector<16x128xf32>
    %28 = arith.select %25, %26, %27 : vector<16x128xi1>, vector<16x128xf32>
    %29 = math.absf %3 : vector<16x128xf32>
    %cst_10 = arith.constant 0.000000e+00 : f32
    %30 = vector.broadcast %cst_10 : f32 to vector<16x128xf32>
    %31 = arith.subf %30, %29 : vector<16x128xf32>
    %32 = math.exp %31 : vector<16x128xf32>
    %33 = math.log1p %32 : vector<16x128xf32>
    %cst_11 = arith.constant 0.000000e+00 : f32
    %34 = vector.broadcast %cst_11 : f32 to vector<16x128xf32>
    %35 = arith.minimumf %3, %34 : vector<16x128xf32>
    %36 = arith.subf %35, %33 : vector<16x128xf32>
    %cst_12 = arith.constant 0.000000e+00 : f32
    %37 = vector.broadcast %cst_12 : f32 to vector<16x128xf32>
    %38 = arith.subf %37, %3 : vector<16x128xf32>
    %cst_13 = arith.constant 0.000000e+00 : f32
    %39 = vector.broadcast %cst_13 : f32 to vector<16x128xf32>
    %40 = arith.minimumf %38, %39 : vector<16x128xf32>
    %41 = arith.subf %40, %33 : vector<16x128xf32>
    %42 = arith.mulf %4, %36 : vector<16x128xf32>
    %cst_14 = arith.constant 0.000000e+00 : f32
    %43 = vector.broadcast %cst_14 : f32 to vector<16x128xf32>
    %44 = arith.select %16, %42, %43 : vector<16x128xi1>, vector<16x128xf32>
    %cst_15 = arith.constant 1.000000e+00 : f32
    %45 = vector.broadcast %cst_15 : f32 to vector<16x128xf32>
    %46 = arith.subf %45, %4 : vector<16x128xf32>
    %47 = arith.mulf %46, %41 : vector<16x128xf32>
    %cst_16 = arith.constant 0.000000e+00 : f32
    %48 = vector.broadcast %cst_16 : f32 to vector<16x128xf32>
    %49 = arith.select %16, %47, %48 : vector<16x128xi1>, vector<16x128xf32>
    %c0_17 = arith.constant 0 : index
    %c0_18 = arith.constant 0 : index
    %c0_19 = arith.constant 0 : index
    %c0_20 = arith.constant 0 : index
    %50 = vector.load %arg4[%c0_17, %c0_18, %c0_19, %c0_20] : memref<1x4x8x128xf32, #tpu.memory_space<vmem>>, vector<1x1x8x128xf32>
    %51 = vector.shape_cast %50 : vector<1x1x8x128xf32> to vector<8x128xf32>
    %52 = vector.shape_cast %22 : vector<16x128xf32> to vector<2x8x128xf32>
    %cst_21 = arith.constant dense<0.000000e+00> : vector<8x128xf32>
    %53 = vector.multi_reduction <add>, %52, %cst_21 [0] : vector<2x8x128xf32> to vector<8x128xf32>
    %54 = arith.addf %51, %53 : vector<8x128xf32>
    %c0_22 = arith.constant 0 : index
    %c0_23 = arith.constant 0 : index
    %c0_24 = arith.constant 0 : index
    %c0_25 = arith.constant 0 : index
    %55 = vector.load %arg4[%c0_22, %c0_23, %c0_24, %c0_25] : memref<1x4x8x128xf32, #tpu.memory_space<vmem>>, vector<1x1x8x128xf32>
    %56 = vector.shape_cast %55 : vector<1x1x8x128xf32> to vector<8x128xf32>
    %57 = vector.shape_cast %54 : vector<8x128xf32> to vector<1x1x8x128xf32>
    tpu.vector_store %arg4[%c0_22, %c0_23, %c0_24, %c0_25], %57 {strides = array<i32>} : memref<1x4x8x128xf32, #tpu.memory_space<vmem>>, vector<1x1x8x128xf32>,
    %c0_26 = arith.constant 0 : index
    %c1 = arith.constant 1 : index
    %c0_27 = arith.constant 0 : index
    %c0_28 = arith.constant 0 : index
    %58 = vector.load %arg4[%c0_26, %c1, %c0_27, %c0_28] : memref<1x4x8x128xf32, #tpu.memory_space<vmem>>, vector<1x1x8x128xf32>
    %59 = vector.shape_cast %58 : vector<1x1x8x128xf32> to vector<8x128xf32>
    %60 = vector.shape_cast %28 : vector<16x128xf32> to vector<2x8x128xf32>
    %cst_29 = arith.constant dense<0.000000e+00> : vector<8x128xf32>
    %61 = vector.multi_reduction <add>, %60, %cst_29 [0] : vector<2x8x128xf32> to vector<8x128xf32>
    %62 = arith.addf %59, %61 : vector<8x128xf32>
    %c0_30 = arith.constant 0 : index
    %c1_31 = arith.constant 1 : index
    %c0_32 = arith.constant 0 : index
    %c0_33 = arith.constant 0 : index
    %63 = vector.load %arg4[%c0_30, %c1_31, %c0_32, %c0_33] : memref<1x4x8x128xf32, #tpu.memory_space<vmem>>, vector<1x1x8x128xf32>
    %64 = vector.shape_cast %63 : vector<1x1x8x128xf32> to vector<8x128xf32>
    %65 = vector.shape_cast %62 : vector<8x128xf32> to vector<1x1x8x128xf32>
    tpu.vector_store %arg4[%c0_30, %c1_31, %c0_32, %c0_33], %65 {strides = array<i32>} : memref<1x4x8x128xf32, #tpu.memory_space<vmem>>, vector<1x1x8x128xf32>,
    %c0_34 = arith.constant 0 : index
    %c2 = arith.constant 2 : index
    %c0_35 = arith.constant 0 : index
    %c0_36 = arith.constant 0 : index
    %66 = vector.load %arg4[%c0_34, %c2, %c0_35, %c0_36] : memref<1x4x8x128xf32, #tpu.memory_space<vmem>>, vector<1x1x8x128xf32>
    %67 = vector.shape_cast %66 : vector<1x1x8x128xf32> to vector<8x128xf32>
    %68 = vector.shape_cast %44 : vector<16x128xf32> to vector<2x8x128xf32>
    %cst_37 = arith.constant dense<0.000000e+00> : vector<8x128xf32>
    %69 = vector.multi_reduction <add>, %68, %cst_37 [0] : vector<2x8x128xf32> to vector<8x128xf32>
    %70 = arith.addf %67, %69 : vector<8x128xf32>
    %c0_38 = arith.constant 0 : index
    %c2_39 = arith.constant 2 : index
    %c0_40 = arith.constant 0 : index
    %c0_41 = arith.constant 0 : index
    %71 = vector.load %arg4[%c0_38, %c2_39, %c0_40, %c0_41] : memref<1x4x8x128xf32, #tpu.memory_space<vmem>>, vector<1x1x8x128xf32>
    %72 = vector.shape_cast %71 : vector<1x1x8x128xf32> to vector<8x128xf32>
    %73 = vector.shape_cast %70 : vector<8x128xf32> to vector<1x1x8x128xf32>
    tpu.vector_store %arg4[%c0_38, %c2_39, %c0_40, %c0_41], %73 {strides = array<i32>} : memref<1x4x8x128xf32, #tpu.memory_space<vmem>>, vector<1x1x8x128xf32>,
    %c0_42 = arith.constant 0 : index
    %c3 = arith.constant 3 : index
    %c0_43 = arith.constant 0 : index
    %c0_44 = arith.constant 0 : index
    %74 = vector.load %arg4[%c0_42, %c3, %c0_43, %c0_44] : memref<1x4x8x128xf32, #tpu.memory_space<vmem>>, vector<1x1x8x128xf32>
    %75 = vector.shape_cast %74 : vector<1x1x8x128xf32> to vector<8x128xf32>
    %76 = vector.shape_cast %49 : vector<16x128xf32> to vector<2x8x128xf32>
    %cst_45 = arith.constant dense<0.000000e+00> : vector<8x128xf32>
    %77 = vector.multi_reduction <add>, %76, %cst_45 [0] : vector<2x8x128xf32> to vector<8x128xf32>
    %78 = arith.addf %75, %77 : vector<8x128xf32>
    %c0_46 = arith.constant 0 : index
    %c3_47 = arith.constant 3 : index
    %c0_48 = arith.constant 0 : index
    %c0_49 = arith.constant 0 : index
    %79 = vector.load %arg4[%c0_46, %c3_47, %c0_48, %c0_49] : memref<1x4x8x128xf32, #tpu.memory_space<vmem>>, vector<1x1x8x128xf32>
    %80 = vector.shape_cast %79 : vector<1x1x8x128xf32> to vector<8x128xf32>
    %81 = vector.shape_cast %78 : vector<8x128xf32> to vector<1x1x8x128xf32>
    tpu.vector_store %arg4[%c0_46, %c3_47, %c0_48, %c0_49], %81 {strides = array<i32>} : memref<1x4x8x128xf32, #tpu.memory_space<vmem>>, vector<1x1x8x128xf32>,
    return
  }
  func.func @transform_0(%arg0: i32, %arg1: i32) -> (i32, i32) {
    %c1_i32 = arith.constant 1 : i32
    %0 = arith.muli %arg0, %c1_i32 : i32
    %1 = arith.addi %0, %arg1 : i32
    %c0_i32 = arith.constant 0 : i32
    %2 = arith.minsi %1, %c0_i32 : i32
    %c0_i32_0 = arith.constant 0 : i32
    %c0_i32_1 = arith.constant 0 : i32
    return %2, %c0_i32_0 : i32, i32
  }
  func.func @transform_1(%arg0: i32, %arg1: i32) -> (i32, i32) {
    %c1_i32 = arith.constant 1 : i32
    %0 = arith.muli %arg0, %c1_i32 : i32
    %1 = arith.addi %0, %arg1 : i32
    %c0_i32 = arith.constant 0 : i32
    %2 = arith.minsi %1, %c0_i32 : i32
    %c0_i32_0 = arith.constant 0 : i32
    %c0_i32_1 = arith.constant 0 : i32
    return %2, %c0_i32_0 : i32, i32
  }
  func.func @transform_2(%arg0: i32, %arg1: i32) -> (i32, i32, i32, i32) {
    %c0_i32 = arith.constant 0 : i32
    %c0_i32_0 = arith.constant 0 : i32
    %c0_i32_1 = arith.constant 0 : i32
    %c0_i32_2 = arith.constant 0 : i32
    return %arg0, %c0_i32, %c0_i32_0, %c0_i32_1 : i32, i32, i32, i32
  }
}

</mosaic_0001>

<bundles_post_ra>
// kernel: tpu_custom_call.1
= control target key start
LH: loop header
LB: loop body
LE: loop exit
PB: predicated region body
PF: predicated region fallthrough
CT: control target
= control target key end

     0   :  { %7 = vsyncpa [#allocation3], 0  ;;  %s340_s0 = inlined_call_operand.hbm [shape: f32[16,128], index: 0, kind: input, shape index: {}]   ;;  %s341_s1 = inlined_call_operand.hbm [shape: f32[16,128], index: 1, kind: input, shape index: {}]   ;;  %s342_s2 = inlined_call_operand.hbm [shape: f32[1,4,8,128], index: 2, kind: output, shape index: {}]  }
   0x1   :  { %8 = vsyncpa [#allocation6], 0 }
   0x2   :  { %9 = vsyncpa [#allocation4], 0  ;;  %s267_s9 = smov [#allocation2]  }
   0x3   :  { %s21_s10 = sshll.u32 %s267_s9, 4  ;;  %s22_s10 = int_to_ptr.vmem [resolvable:$true] %s21_s10 }
   0x4   :  { %s209_s11 = scalar_lea.vmem %s22_s10, 256  ;;  %p214_p1 = scmp.lt.s32.totalorder %s22_s10, %s22_s10 }
   0x5   :  { %p210_p0 = scmp.ne.s32.totalorder %s22_s10, %s209_s11  ;;  %p215_p2 = scmp.lt.s32.totalorder %s209_s11, %s209_s11 }
   0x7   :  { %p216_p3 = por %p215_p2, %p214_p1 }
   0x9   :  { %p217_p4 = pnand %p216_p3, %p210_p0 }
   0xb   :  { %220 = shalt.err (!%p217_p4)
}
   0xc   :  { %s268_s12 = smov 128   ;;  %s269_s13 = smov 8  }
   0xd   :  { %27 = dma.hbm_to_vmem [thread:$0]  %s340_s0, 256, %s22_s10, [#allocation3], %s268_s12, %s268_s12, %s269_s13  }
   0xe   :  { %s270_s16 = smov [#allocation5]  }
   0xf   :  { %s39_s17 = sshll.u32 %s270_s16, 4  ;;  %s40_s17 = int_to_ptr.vmem [resolvable:$true] %s39_s17 }
  0x10   :  { %s229_s18 = scalar_lea.vmem %s40_s17, 256  ;;  %p234_p6 = scmp.lt.s32.totalorder %s40_s17, %s40_s17 }
  0x11   :  { %p230_p5 = scmp.ne.s32.totalorder %s40_s17, %s229_s18  ;;  %p235_p7 = scmp.lt.s32.totalorder %s229_s18, %s229_s18 }
  0x13   :  { %p236_p8 = por %p235_p7, %p234_p6 }
  0x15   :  { %p237_p9 = pnand %p236_p8, %p230_p5 }
  0x17   :  { %240 = shalt.err (!%p237_p9)
}
  0x18   :  { %45 = dma.hbm_to_vmem [thread:$0]  %s341_s1, 256, %s40_s17, [#allocation6], %s268_s12, %s268_s12, %s269_s13  }
  0x19   :  { %261 = dma.done.wait [#allocation3], 256  }
  0x1a   :  { %262 = vsyncadd [#allocation3], 4294967040 }
  0x1b   :  { %263 = dma.done.wait [#allocation6], 256  }
  0x1c   :  { %264 = vsyncadd [#allocation6], 4294967040  ;;  %v73_v0 = vlaneseq  ;;  %v302_v7 = vld [vmem:[#allocation5] sm:$0xff]  ;;  %v304_v8 = vld [vmem:[#allocation5 + $0x8] sm:$0xff]  ;;  %v271_v14 = vmov 0.0   ;;  %s272_s0 = smov [#allocation7]  }
  0x1d   :  { %v68_v9 = vld [vmem:[#allocation2] sm:$0xff]  ;;  %vm88_vm1 = vcmp.eq.f32.partialorder %v302_v7, 1.0  ;;  %vm89_vm2 = vcmp.eq.f32.partialorder %v304_v8, 1.0  ;;  %v69_v11 = vld [vmem:[#allocation2 + $0x8] sm:$0xff]  ;;  %vm94_vm4 = vcmp.eq.f32.partialorder %v302_v7, 0.0  ;;  %vm95_vm5 = vcmp.eq.f32.partialorder %v304_v8, 0.0 }
  0x1e   :  { %v74_v1 = vshrl.u32 %v73_v0, 7  ;;  %v77_v2 = vand.u32 127, %v73_v0  ;;  %v100_v12 = vand.u32 2147483647, %v68_v9  ;;  %v101_v13 = vand.u32 2147483647, %v69_v11 }
  0x1f   :  { %v130_v34 = vsub.f32 0.0, %v68_v9  ;;  %v131_v36 = vsub.f32 0.0, %v69_v11  ;;  %v126_v40 = vmin.f32 %v68_v9, 0.0  ;;  %v127_v44 = vmin.f32 %v69_v11, 0.0  ;;  %s170_s1 = sshll.u32 %s272_s0, 4  ;;  %s171_s1 = int_to_ptr.vmem [resolvable:$true] %s170_s1 }
  0x20   :  { %v75_v3 = vadd.s32 8, %v74_v1  ;;  %v79_v4 = vmul.u32 128, %v74_v1  ;;  %v102_v17 = vsub.f32 0.0, %v100_v12  ;;  %v103_v18 = vsub.f32 0.0, %v101_v13  ;;  %s241_s21 = scalar_lea.vmem %s171_s1, 512  ;;  %p246_p11 = scmp.lt.s32.totalorder %s171_s1, %s171_s1 }
  0x21   :  { %v132_v41 = vmin.f32 %v130_v34, 0.0  ;;  %v133_v45 = vmin.f32 %v131_v36, 0.0  ;;  %v140_v47 = vsub.f32 1.0, %v302_v7  ;;  %v141_v49 = vsub.f32 1.0, %v304_v8  ;;  %p242_p10 = scmp.ne.s32.totalorder %s171_s1, %s241_s21  ;;  %p247_p12 = scmp.lt.s32.totalorder %s241_s21, %s241_s21 }
  0x22   :  { %v80_v5 = vmul.u32 128, %v75_v3  ;;  %v300_v6 = vadd.s32 %v79_v4, %v77_v2  ;;  %v104_v22 = vmul.f32 1.442695, %v102_v17  ;;  %v106_v23 = vmul.f32 1.442695, %v103_v18 }
  0x23   :  { %p248_p13 = por %p247_p12, %p246_p11 }
  0x24   :  { %v306_v10 = vadd.s32 %v80_v5, %v77_v2  ;;  %vm86_vm0 = vcmp.lt.s32.totalorder %v300_v6, 2048  ;;  %193 = vpow2.f32 %v104_v22 }
  0x25   :  { %vm90_vm3 = vmand %vm86_vm0, %vm88_vm1  ;;  %195 = vpow2.f32 %v106_v23  ;;  %p249_p0 = pnand %p248_p13, %p242_p10 }
  0x26   :  { %vm87_vm6 = vcmp.lt.s32.totalorder %v306_v10, 2048  ;;  %v92_v15 = vsel %vm90_vm3, 1.0, %v271_v14  ;;  %vm96_vm7 = vmand %vm86_vm0, %vm94_vm4 }
  0x27   :  { %vm91_vm8 = vmand %vm87_vm6, %vm89_vm2  ;;  %v98_v16 = vsel %vm96_vm7, 1.0, %v271_v14 }
  0x28   :  { %v93_v19 = vsel %vm91_vm8, 1.0, %v271_v14  ;;  %vm97_vm9 = vmand %vm87_vm6, %vm95_vm5 }
  0x29   :  { %v147_v20 = vadd.f32 %v93_v19, %v92_v15  ;;  %v99_v21 = vsel %vm97_vm9, 1.0, %v271_v14 }
  0x2a   :  { %v152_v24 = vadd.f32 %v99_v21, %v98_v16 }
  0x2b   :  { %149 = vst [vmem:[#allocation7] sm:$0xff] %v147_v20 }
  0x2c   :  { %154 = vst [vmem:[#allocation7 + $0x8] sm:$0xff] %v152_v24 }
  0x31   :  { %v194_v25 = vpop.eup %193 }
  0x32   :  { %v196_v26 = vpop.eup %195  ;;  %v108_v27 = vadd.f32 1.0, %v194_v25  ;;  %v111_v29 = vmul.f32 -0.5, %v194_v25  ;;  %v114_v32 = vand.u32 2147483647, %v194_v25 }
  0x33   :  { %v117_v28 = vadd.f32 1.0, %v196_v26  ;;  %v120_v30 = vmul.f32 -0.5, %v196_v26  ;;  %v123_v35 = vand.u32 2147483647, %v196_v26 }
  0x34   :  { %197 = vlog2.f32 %v108_v27  ;;  %v112_v31 = vadd.f32 1.0, %v111_v29  ;;  %vm115_vm10 = vcmp.lt.f32.partialorder %v114_v32, 0.0004427343 }
  0x35   :  { %199 = vlog2.f32 %v117_v28  ;;  %v121_v33 = vadd.f32 1.0, %v120_v30  ;;  %vm124_vm11 = vcmp.lt.f32.partialorder %v123_v35, 0.0004427343 }
  0x36   :  { %v113_v37 = vmul.f32 %v194_v25, %v112_v31 }
  0x37   :  { %v122_v39 = vmul.f32 %v196_v26, %v121_v33 }
  0x41   :  { %v198_v38 = vpop.eup %197 }
  0x42   :  { %v200_v42 = vpop.eup %199  ;;  %v110_v43 = vmul.f32 0.6931472, %v198_v38 }
  0x43   :  { %v119_v46 = vmul.f32 0.6931472, %v200_v42 }
  0x44   :  { %v116_v48 = vsel %vm115_vm10, %v113_v37, %v110_v43 }
  0x45   :  { %v125_v50 = vsel %vm124_vm11, %v122_v39, %v119_v46  ;;  %v128_v51 = vsub.f32 %v126_v40, %v116_v48  ;;  %v134_v52 = vsub.f32 %v132_v41, %v116_v48 }
  0x46   :  { %v129_v53 = vsub.f32 %v127_v44, %v125_v50  ;;  %v135_v54 = vsub.f32 %v133_v45, %v125_v50 }
  0x47   :  { %v136_v55 = vmul.f32 %v128_v51, %v302_v7  ;;  %v142_v56 = vmul.f32 %v140_v47, %v134_v52 }
  0x48   :  { %v137_v57 = vmul.f32 %v129_v53, %v304_v8  ;;  %v143_v58 = vmul.f32 %v141_v49, %v135_v54 }
  0x49   :  { %v138_v59 = vsel %vm86_vm0, %v136_v55, 0.0  ;;  %v144_v60 = vsel %vm86_vm0, %v142_v56, 0.0 }
  0x4a   :  { %v139_v61 = vsel %vm87_vm6, %v137_v57, 0.0  ;;  %v145_v62 = vsel %vm87_vm6, %v143_v58, 0.0 }
  0x4b   :  { %v157_v63 = vadd.f32 %v139_v61, %v138_v59  ;;  %v162_v0 = vadd.f32 %v145_v62, %v144_v60 }
  0x4d   :  { %159 = vst [vmem:[#allocation7 + $0x10] sm:$0xff] %v157_v63  ;;  %164 = vst [vmem:[#allocation7 + $0x18] sm:$0xff] %v162_v0 }
  0x4e   :  { %252 = shalt.err (!%p249_p0)
}
  0x4f   :  { %176 = dma.vmem_to_hbm [thread:$0]  %s171_s1, 512, %s342_s2, [#allocation4], %s268_s12, %s268_s12, %s269_s13  }
  0x50   :  { %265 = dma.done.wait [#allocation4], 512  }
  0x51   :  { %266 = vsyncadd [#allocation4], 4294966784 }
  0x52   :  { %180 = vsyncpa [#allocation3], 1 }
  0x53   :  { %181 = vsyncpa [#allocation6], 1 }
  0x54   :  { %182 = vsyncpa [#allocation4], 1 }

</bundles_post_ra>
